<compile_context>
chip_gen: v7x
topology: tpu7x:2x2x1
jax: 0.10.0
libtpu: 0.0.40
codegen_flags: <defaults>
</compile_context>

<pallas_src>
import numpy as np
import jax
import jax.numpy as jnp
from jax import lax
from jax.experimental import pallas as pl
from jax.experimental.pallas import tpu as pltpu

LAMBDA_CLIP = 1.0       # lambda_clip default
LAMBDA_AVG = 1.0        # lambda_average default
NORM_EPS = 1e-12        # F.normalize default eps

VMEM = pltpu.MemorySpace.VMEM
SMEM = pltpu.MemorySpace.SMEM


# ----------------------------------------------------------------------------
# helpers: MXU matmuls with explicit contraction dims (no layout transposes)
# ----------------------------------------------------------------------------
def _dot_nn(a, b):
    # (M, K) x (K, N) -> (M, N)
    return lax.dot_general(a, b, (((1,), (0,)), ((), ())),
                           preferred_element_type=jnp.float32)


def _dot_nt(a, b):
    # (M, K) x (N, K) -> (M, N)   (contract last dims of both; no transpose)
    return lax.dot_general(a, b, (((1,), (1,)), ((), ())),
                           preferred_element_type=jnp.float32)


# ----------------------------------------------------------------------------
# The fused kernel
# ----------------------------------------------------------------------------
def clip_sim_kernel(temps_ref, ids_ref, eeg_ref, sp_ref,
                    w_e_ref, b_e_ref, w_s_ref, b_s_ref, bank_ref, out_ref):
    # --- synthetic encoders: one MXU matmul each; features stay on-chip ---
    eeg_feat = _dot_nn(eeg_ref[...], w_e_ref[...]) + b_e_ref[...]   # (B, D)
    sp_feat = _dot_nn(sp_ref[...], w_s_ref[...]) + b_s_ref[...]     # (B, D)

    def l2norm(x):
        nrm = jnp.sqrt(jnp.sum(x * x, axis=1, keepdims=True))
        return x / jnp.maximum(nrm, NORM_EPS)

    eeg_n = l2norm(eeg_feat)
    sp_n = l2norm(sp_feat)

    # --- eegMemoryBank(ids, EEG_features): one-hot gather on the MXU + blend ---
    B = eeg_n.shape[0]
    n_ids = bank_ref.shape[0]
    ids = ids_ref[...]                                               # (B, 1) int32
    onehot = (ids == lax.broadcasted_iota(jnp.int32, (B, n_ids), 1))
    bank_rows = _dot_nn(onehot.astype(jnp.float32), bank_ref[...])   # (B, D)
    avg_n = l2norm(0.5 * (bank_rows + eeg_n))

    scale = jnp.exp(temps_ref[0])          # exp(temperature)
    scale_eeg = jnp.exp(temps_ref[1])      # exp(temperature_eeg)

    # --- logits: three tiny MXU pushes; keep ALL reductions row-wise ---
    logits = _dot_nt(sp_n, eeg_n) * scale          # (B, B)
    logits_t = _dot_nt(eeg_n, sp_n) * scale        # == logits.T (same diagonal)
    logits_eeg = _dot_nt(avg_n, eeg_n) * scale_eeg

    row = lax.broadcasted_iota(jnp.int32, (B, B), 0)
    col = lax.broadcasted_iota(jnp.int32, (B, B), 1)
    diag_mask = (row == col).astype(jnp.float32)

    def row_ce(lg, diag):
        m = jnp.max(lg, axis=1, keepdims=True)
        lse = m + jnp.log(jnp.sum(jnp.exp(lg - m), axis=1, keepdims=True))
        return jnp.mean(lse - diag)

    diag = jnp.sum(logits * diag_mask, axis=1, keepdims=True)        # shared
    diag_eeg = jnp.sum(logits_eeg * diag_mask, axis=1, keepdims=True)

    speech_loss = row_ce(logits, diag)
    eeg_loss = row_ce(logits_t, diag)        # diagonal identical to logits'
    eeg_avg_loss = row_ce(logits_eeg, diag_eeg)

    loss_ce = 0.5 * (speech_loss + eeg_loss)
    loss_total = LAMBDA_CLIP * loss_ce + LAMBDA_AVG * eeg_avg_loss

    out_ref[0] = loss_ce
    out_ref[1] = eeg_avg_loss
    out_ref[2] = loss_total


# ----------------------------------------------------------------------------
# Wrapper: single pallas_call, everything resident in VMEM/SMEM
# ----------------------------------------------------------------------------
def clip_sim_forward(params, eeg, speech, ids):
    B = eeg.shape[0]
    eeg_flat = eeg.reshape(B, -1).astype(jnp.float32)
    sp_flat = speech.reshape(B, -1).astype(jnp.float32)
    temps = jnp.stack([params["temperature"],
                       params["temperature_eeg"]]).astype(jnp.float32)
    ids_2d = ids.reshape(B, 1).astype(jnp.int32)

    out = pl.pallas_call(
        clip_sim_kernel,
        out_shape=jax.ShapeDtypeStruct((3,), jnp.float32),
        in_specs=[
            pl.BlockSpec(memory_space=SMEM),   # temperatures (2,)
            pl.BlockSpec(memory_space=VMEM),   # ids (B,1) int32
            pl.BlockSpec(memory_space=VMEM),   # eeg_flat
            pl.BlockSpec(memory_space=VMEM),   # sp_flat
            pl.BlockSpec(memory_space=VMEM),   # w_eeg
            pl.BlockSpec(memory_space=VMEM),   # b_eeg
            pl.BlockSpec(memory_space=VMEM),   # w_sp
            pl.BlockSpec(memory_space=VMEM),   # b_sp
            pl.BlockSpec(memory_space=VMEM),   # memory bank
        ],
        out_specs=pl.BlockSpec(memory_space=SMEM),
    )(temps, ids_2d, eeg_flat, sp_flat,
      params["w_eeg"], params["b_eeg"].reshape(1, -1),
      params["w_sp"], params["b_sp"].reshape(1, -1),
      params["bank"])
    return out[0], out[1], out[2]


# ----------------------------------------------------------------------------
# Deterministic parameter init (PyTorch-Linear-style uniform bounds)
# ----------------------------------------------------------------------------
def init_params(key, eeg_in, sp_in, feat_dim, n_ids):
    ks = jax.random.split(key, 3)

    def lin(k, fin, fout):
        kw, kb = jax.random.split(k)
        bound = 1.0 / np.sqrt(fin)
        w = jax.random.uniform(kw, (fin, fout), jnp.float32, -bound, bound)
        b = jax.random.uniform(kb, (fout,), jnp.float32, -bound, bound)
        return w, b

    w_e, b_e = lin(ks[0], eeg_in, feat_dim)
    w_s, b_s = lin(ks[1], sp_in, feat_dim)
    bank = jax.random.normal(ks[2], (n_ids, feat_dim), jnp.float32)
    return {
        "w_eeg": w_e, "b_eeg": b_e,
        "w_sp": w_s, "b_sp": b_s,
        "bank": bank,
        "temperature": jnp.float32(1.0),
        "temperature_eeg": jnp.float32(1.0),
    }


# ----------------------------------------------------------------------------
# Pure-JAX reference for verification
# ----------------------------------------------------------------------------
def reference_forward(params, eeg, speech, ids):
    B = eeg.shape[0]
    eeg_feat = eeg.reshape(B, -1) @ params["w_eeg"] + params["b_eeg"]
    sp_feat = speech.reshape(B, -1) @ params["w_sp"] + params["b_sp"]

    def l2n(x):
        return x / jnp.maximum(jnp.linalg.norm(x, axis=1, keepdims=True), NORM_EPS)

    eeg_n = l2n(eeg_feat)
    sp_n = l2n(sp_feat)
    avg_n = l2n(0.5 * (params["bank"][ids] + eeg_n))

    logits = sp_n @ eeg_n.T * jnp.exp(params["temperature"])
    logits_eeg = avg_n @ eeg_n.T * jnp.exp(params["temperature_eeg"])

    tgt = jnp.arange(B)

    def ce(lg):
        return -jnp.mean(jax.nn.log_softmax(lg, axis=1)[tgt, tgt])

    speech_loss = ce(logits)
    eeg_loss = ce(logits.T)
    eeg_avg_loss = ce(logits_eeg)
    loss_ce = 0.5 * (speech_loss + eeg_loss)
    loss_total = LAMBDA_CLIP * loss_ce + LAMBDA_AVG * eeg_avg_loss
    return jnp.stack([loss_ce, eeg_avg_loss, loss_total])


if __name__ == "__main__":
    B = 8
    C_EEG, T_EEG = 4, 16      # eeg input:    (B, 4, 16)
    C_SP, T_SP = 2, 24        # speech input: (B, 2, 24)
    FEAT = 128                # shared (lane-dense) feature dim
    N_IDS = 8                 # memory-bank size

    key = jax.random.PRNGKey(0)
    kp, ke, ksp, ki = jax.random.split(key, 4)
    params = init_params(kp, C_EEG * T_EEG, C_SP * T_SP, FEAT, N_IDS)

    eeg = jax.random.normal(ke, (B, C_EEG, T_EEG), jnp.float32)
    speech = jax.random.normal(ksp, (B, C_SP, T_SP), jnp.float32)
    ids = jax.random.randint(ki, (B,), 0, N_IDS)

    out = clip_sim_forward(params, eeg, speech, ids)
    out = jax.block_until_ready(jnp.stack(out))

    ref = reference_forward(params, eeg, speech, ids)
    np.testing.assert_allclose(np.array(out), np.array(ref), rtol=1e-3, atol=1e-3)

    print("KERNEL_OK")
</pallas_src>

<mosaic_0001>
module attributes {stable_mosaic.version = 11 : i64} {
  func.func @clip_sim_kernel(%arg0: memref<2xf32, #tpu.memory_space<smem>>, %arg1: memref<8x1xi32, #tpu.memory_space<vmem>>, %arg2: memref<8x64xf32, #tpu.memory_space<vmem>>, %arg3: memref<8x48xf32, #tpu.memory_space<vmem>>, %arg4: memref<64x128xf32, #tpu.memory_space<vmem>>, %arg5: memref<1x128xf32, #tpu.memory_space<vmem>>, %arg6: memref<48x128xf32, #tpu.memory_space<vmem>>, %arg7: memref<1x128xf32, #tpu.memory_space<vmem>>, %arg8: memref<8x128xf32, #tpu.memory_space<vmem>>, %arg9: memref<3xf32, #tpu.memory_space<smem>>) attributes {dimension_semantics = [], scalar_prefetch = 0 : i64, scratch_operands = 0 : i64, tpu.core_type = #tpu.core_type<tc>} {
    %c0 = arith.constant 0 : index
    %c0_0 = arith.constant 0 : index
    %0 = vector.load %arg2[%c0, %c0_0] : memref<8x64xf32, #tpu.memory_space<vmem>>, vector<8x64xf32>
    %c0_1 = arith.constant 0 : index
    %c0_2 = arith.constant 0 : index
    %1 = vector.load %arg4[%c0_1, %c0_2] : memref<64x128xf32, #tpu.memory_space<vmem>>, vector<64x128xf32>
    %cst = arith.constant dense<0.000000e+00> : vector<8x128xf32>
    %2 = tpu.matmul %0, %1, %cst {dimension_numbers = #tpu.dot_dimension_numbers<[1], [0], [0], [1], [0, 0, 1, 1], [], []>} : vector<8x64xf32>, vector<64x128xf32>, vector<8x128xf32> -> vector<8x128xf32>
    %c0_3 = arith.constant 0 : index
    %c0_4 = arith.constant 0 : index
    %3 = vector.load %arg5[%c0_3, %c0_4] : memref<1x128xf32, #tpu.memory_space<vmem>>, vector<1x128xf32>
    %4 = vector.broadcast %3 : vector<1x128xf32> to vector<8x128xf32>
    %5 = arith.addf %2, %4 : vector<8x128xf32>
    %c0_5 = arith.constant 0 : index
    %c0_6 = arith.constant 0 : index
    %6 = vector.load %arg3[%c0_5, %c0_6] : memref<8x48xf32, #tpu.memory_space<vmem>>, vector<8x48xf32>
    %c0_7 = arith.constant 0 : index
    %c0_8 = arith.constant 0 : index
    %7 = vector.load %arg6[%c0_7, %c0_8] : memref<48x128xf32, #tpu.memory_space<vmem>>, vector<48x128xf32>
    %cst_9 = arith.constant dense<0.000000e+00> : vector<8x128xf32>
    %8 = tpu.matmul %6, %7, %cst_9 {dimension_numbers = #tpu.dot_dimension_numbers<[1], [0], [0], [1], [0, 0, 1, 1], [], []>} : vector<8x48xf32>, vector<48x128xf32>, vector<8x128xf32> -> vector<8x128xf32>
    %c0_10 = arith.constant 0 : index
    %c0_11 = arith.constant 0 : index
    %9 = vector.load %arg7[%c0_10, %c0_11] : memref<1x128xf32, #tpu.memory_space<vmem>>, vector<1x128xf32>
    %10 = vector.broadcast %9 : vector<1x128xf32> to vector<8x128xf32>
    %11 = arith.addf %8, %10 : vector<8x128xf32>
    %12 = arith.mulf %5, %5 : vector<8x128xf32>
    %cst_12 = arith.constant dense<0.000000e+00> : vector<8xf32>
    %13 = vector.multi_reduction <add>, %12, %cst_12 [1] : vector<8x128xf32> to vector<8xf32>
    %14 = vector.shape_cast %13 : vector<8xf32> to vector<8x1xf32>
    %15 = math.sqrt %14 : vector<8x1xf32>
    %cst_13 = arith.constant 9.99999996E-13 : f32
    %16 = vector.broadcast %cst_13 : f32 to vector<8x1xf32>
    %17 = arith.maximumf %15, %16 : vector<8x1xf32>
    %18 = vector.broadcast %17 : vector<8x1xf32> to vector<8x128xf32>
    %19 = arith.divf %5, %18 : vector<8x128xf32>
    %20 = arith.mulf %11, %11 : vector<8x128xf32>
    %cst_14 = arith.constant dense<0.000000e+00> : vector<8xf32>
    %21 = vector.multi_reduction <add>, %20, %cst_14 [1] : vector<8x128xf32> to vector<8xf32>
    %22 = vector.shape_cast %21 : vector<8xf32> to vector<8x1xf32>
    %23 = math.sqrt %22 : vector<8x1xf32>
    %cst_15 = arith.constant 9.99999996E-13 : f32
    %24 = vector.broadcast %cst_15 : f32 to vector<8x1xf32>
    %25 = arith.maximumf %23, %24 : vector<8x1xf32>
    %26 = vector.broadcast %25 : vector<8x1xf32> to vector<8x128xf32>
    %27 = arith.divf %11, %26 : vector<8x128xf32>
    %c0_16 = arith.constant 0 : index
    %c0_17 = arith.constant 0 : index
    %28 = vector.load %arg1[%c0_16, %c0_17] : memref<8x1xi32, #tpu.memory_space<vmem>>, vector<8x1xi32>
    %29 = tpu.iota {dimensions = array<i32: 1>} : vector<8x8xi32>
    %30 = vector.broadcast %28 : vector<8x1xi32> to vector<8x8xi32>
    %31 = arith.cmpi eq, %30, %29 : vector<8x8xi32>
    %32 = arith.extui %31 : vector<8x8xi1> to vector<8x8xi32>
    %33 = arith.sitofp %32 : vector<8x8xi32> to vector<8x8xf32>
    %c0_18 = arith.constant 0 : index
    %c0_19 = arith.constant 0 : index
    %34 = vector.load %arg8[%c0_18, %c0_19] : memref<8x128xf32, #tpu.memory_space<vmem>>, vector<8x128xf32>
    %cst_20 = arith.constant dense<0.000000e+00> : vector<8x128xf32>
    %35 = tpu.matmul %33, %34, %cst_20 {dimension_numbers = #tpu.dot_dimension_numbers<[1], [0], [0], [1], [0, 0, 1, 1], [], []>} : vector<8x8xf32>, vector<8x128xf32>, vector<8x128xf32> -> vector<8x128xf32>
    %36 = arith.addf %35, %19 : vector<8x128xf32>
    %cst_21 = arith.constant 5.000000e-01 : f32
    %37 = vector.broadcast %cst_21 : f32 to vector<8x128xf32>
    %38 = arith.mulf %37, %36 : vector<8x128xf32>
    %39 = arith.mulf %38, %38 : vector<8x128xf32>
    %cst_22 = arith.constant dense<0.000000e+00> : vector<8xf32>
    %40 = vector.multi_reduction <add>, %39, %cst_22 [1] : vector<8x128xf32> to vector<8xf32>
    %41 = vector.shape_cast %40 : vector<8xf32> to vector<8x1xf32>
    %42 = math.sqrt %41 : vector<8x1xf32>
    %cst_23 = arith.constant 9.99999996E-13 : f32
    %43 = vector.broadcast %cst_23 : f32 to vector<8x1xf32>
    %44 = arith.maximumf %42, %43 : vector<8x1xf32>
    %45 = vector.broadcast %44 : vector<8x1xf32> to vector<8x128xf32>
    %46 = arith.divf %38, %45 : vector<8x128xf32>
    %c0_24 = arith.constant 0 : index
    %47 = memref.load %arg0[%c0_24] : memref<2xf32, #tpu.memory_space<smem>>
    %48 = math.exp %47 : f32
    %c1 = arith.constant 1 : index
    %49 = memref.load %arg0[%c1] : memref<2xf32, #tpu.memory_space<smem>>
    %50 = math.exp %49 : f32
    %cst_25 = arith.constant dense<0.000000e+00> : vector<8x8xf32>
    %51 = tpu.matmul %27, %19, %cst_25 {dimension_numbers = #tpu.dot_dimension_numbers<[1], [1], [0], [0], [0, 0, 1, 0], [], []>} : vector<8x128xf32>, vector<8x128xf32>, vector<8x8xf32> -> vector<8x8xf32>
    %52 = vector.broadcast %48 : f32 to vector<8x8xf32>
    %53 = arith.mulf %51, %52 : vector<8x8xf32>
    %cst_26 = arith.constant dense<0.000000e+00> : vector<8x8xf32>
    %54 = tpu.matmul %19, %27, %cst_26 {dimension_numbers = #tpu.dot_dimension_numbers<[1], [1], [0], [0], [0, 0, 1, 0], [], []>} : vector<8x128xf32>, vector<8x128xf32>, vector<8x8xf32> -> vector<8x8xf32>
    %55 = vector.broadcast %48 : f32 to vector<8x8xf32>
    %56 = arith.mulf %54, %55 : vector<8x8xf32>
    %cst_27 = arith.constant dense<0.000000e+00> : vector<8x8xf32>
    %57 = tpu.matmul %46, %19, %cst_27 {dimension_numbers = #tpu.dot_dimension_numbers<[1], [1], [0], [0], [0, 0, 1, 0], [], []>} : vector<8x128xf32>, vector<8x128xf32>, vector<8x8xf32> -> vector<8x8xf32>
    %58 = vector.broadcast %50 : f32 to vector<8x8xf32>
    %59 = arith.mulf %57, %58 : vector<8x8xf32>
    %60 = tpu.iota {dimensions = array<i32: 0>} : vector<8x8xi32>
    %61 = tpu.iota {dimensions = array<i32: 1>} : vector<8x8xi32>
    %62 = arith.cmpi eq, %60, %61 : vector<8x8xi32>
    %63 = arith.extui %62 : vector<8x8xi1> to vector<8x8xi32>
    %64 = arith.sitofp %63 : vector<8x8xi32> to vector<8x8xf32>
    %65 = arith.mulf %53, %64 : vector<8x8xf32>
    %cst_28 = arith.constant dense<0.000000e+00> : vector<8xf32>
    %66 = vector.multi_reduction <add>, %65, %cst_28 [1] : vector<8x8xf32> to vector<8xf32>
    %67 = vector.shape_cast %66 : vector<8xf32> to vector<8x1xf32>
    %68 = arith.mulf %59, %64 : vector<8x8xf32>
    %cst_29 = arith.constant dense<0.000000e+00> : vector<8xf32>
    %69 = vector.multi_reduction <add>, %68, %cst_29 [1] : vector<8x8xf32> to vector<8xf32>
    %70 = vector.shape_cast %69 : vector<8xf32> to vector<8x1xf32>
    %cst_30 = arith.constant dense<0xFF800000> : vector<8xf32>
    %71 = vector.multi_reduction <maximumf>, %53, %cst_30 [1] : vector<8x8xf32> to vector<8xf32>
    %72 = vector.shape_cast %71 : vector<8xf32> to vector<8x1xf32>
    %73 = vector.broadcast %72 : vector<8x1xf32> to vector<8x8xf32>
    %74 = arith.subf %53, %73 : vector<8x8xf32>
    %75 = math.exp %74 : vector<8x8xf32>
    %cst_31 = arith.constant dense<0.000000e+00> : vector<8xf32>
    %76 = vector.multi_reduction <add>, %75, %cst_31 [1] : vector<8x8xf32> to vector<8xf32>
    %77 = vector.shape_cast %76 : vector<8xf32> to vector<8x1xf32>
    %78 = math.log %77 : vector<8x1xf32>
    %79 = arith.addf %72, %78 : vector<8x1xf32>
    %80 = arith.subf %79, %67 : vector<8x1xf32>
    %81 = vector.shape_cast %80 : vector<8x1xf32> to vector<1x8x1xf32>
    %cst_32 = arith.constant dense<0.000000e+00> : vector<1xf32>
    %82 = vector.multi_reduction <add>, %81, %cst_32 [1, 2] : vector<1x8x1xf32> to vector<1xf32>
    %83 = vector.shape_cast %82 : vector<1xf32> to vector<1x1x1xf32>
    %84 = vector.extract %83[0, 0, 0] : f32 from vector<1x1x1xf32>
    %cst_33 = arith.constant 8.000000e+00 : f32
    %85 = arith.divf %84, %cst_33 : f32
    %cst_34 = arith.constant dense<0xFF800000> : vector<8xf32>
    %86 = vector.multi_reduction <maximumf>, %56, %cst_34 [1] : vector<8x8xf32> to vector<8xf32>
    %87 = vector.shape_cast %86 : vector<8xf32> to vector<8x1xf32>
    %88 = vector.broadcast %87 : vector<8x1xf32> to vector<8x8xf32>
    %89 = arith.subf %56, %88 : vector<8x8xf32>
    %90 = math.exp %89 : vector<8x8xf32>
    %cst_35 = arith.constant dense<0.000000e+00> : vector<8xf32>
    %91 = vector.multi_reduction <add>, %90, %cst_35 [1] : vector<8x8xf32> to vector<8xf32>
    %92 = vector.shape_cast %91 : vector<8xf32> to vector<8x1xf32>
    %93 = math.log %92 : vector<8x1xf32>
    %94 = arith.addf %87, %93 : vector<8x1xf32>
    %95 = arith.subf %94, %67 : vector<8x1xf32>
    %96 = vector.shape_cast %95 : vector<8x1xf32> to vector<1x8x1xf32>
    %cst_36 = arith.constant dense<0.000000e+00> : vector<1xf32>
    %97 = vector.multi_reduction <add>, %96, %cst_36 [1, 2] : vector<1x8x1xf32> to vector<1xf32>
    %98 = vector.shape_cast %97 : vector<1xf32> to vector<1x1x1xf32>
    %99 = vector.extract %98[0, 0, 0] : f32 from vector<1x1x1xf32>
    %cst_37 = arith.constant 8.000000e+00 : f32
    %100 = arith.divf %99, %cst_37 : f32
    %cst_38 = arith.constant dense<0xFF800000> : vector<8xf32>
    %101 = vector.multi_reduction <maximumf>, %59, %cst_38 [1] : vector<8x8xf32> to vector<8xf32>
    %102 = vector.shape_cast %101 : vector<8xf32> to vector<8x1xf32>
    %103 = vector.broadcast %102 : vector<8x1xf32> to vector<8x8xf32>
    %104 = arith.subf %59, %103 : vector<8x8xf32>
    %105 = math.exp %104 : vector<8x8xf32>
    %cst_39 = arith.constant dense<0.000000e+00> : vector<8xf32>
    %106 = vector.multi_reduction <add>, %105, %cst_39 [1] : vector<8x8xf32> to vector<8xf32>
    %107 = vector.shape_cast %106 : vector<8xf32> to vector<8x1xf32>
    %108 = math.log %107 : vector<8x1xf32>
    %109 = arith.addf %102, %108 : vector<8x1xf32>
    %110 = arith.subf %109, %70 : vector<8x1xf32>
    %111 = vector.shape_cast %110 : vector<8x1xf32> to vector<1x8x1xf32>
    %cst_40 = arith.constant dense<0.000000e+00> : vector<1xf32>
    %112 = vector.multi_reduction <add>, %111, %cst_40 [1, 2] : vector<1x8x1xf32> to vector<1xf32>
    %113 = vector.shape_cast %112 : vector<1xf32> to vector<1x1x1xf32>
    %114 = vector.extract %113[0, 0, 0] : f32 from vector<1x1x1xf32>
    %cst_41 = arith.constant 8.000000e+00 : f32
    %115 = arith.divf %114, %cst_41 : f32
    %116 = arith.addf %85, %100 : f32
    %cst_42 = arith.constant 5.000000e-01 : f32
    %117 = arith.mulf %cst_42, %116 : f32
    %cst_43 = arith.constant 1.000000e+00 : f32
    %118 = arith.mulf %cst_43, %117 : f32
    %cst_44 = arith.constant 1.000000e+00 : f32
    %119 = arith.mulf %cst_44, %115 : f32
    %120 = arith.addf %118, %119 : f32
    %c0_45 = arith.constant 0 : index
    %121 = memref.load %arg9[%c0_45] : memref<3xf32, #tpu.memory_space<smem>>
    memref.store %117, %arg9[%c0_45] : memref<3xf32, #tpu.memory_space<smem>>
    %c1_46 = arith.constant 1 : index
    %122 = memref.load %arg9[%c1_46] : memref<3xf32, #tpu.memory_space<smem>>
    memref.store %115, %arg9[%c1_46] : memref<3xf32, #tpu.memory_space<smem>>
    %c2 = arith.constant 2 : index
    %123 = memref.load %arg9[%c2] : memref<3xf32, #tpu.memory_space<smem>>
    memref.store %120, %arg9[%c2] : memref<3xf32, #tpu.memory_space<smem>>
    return
  }
}

</mosaic_0001>

<bundles_post_ra>
// kernel: tpu_custom_call.1
= control target key start
LH: loop header
LB: loop body
LE: loop exit
PB: predicated region body
PF: predicated region fallthrough
CT: control target
= control target key end

     0   :  { %14 = vsyncpa [#allocation4], 0  ;;  %s1103_s0 = inlined_call_operand.hbm [shape: f32[2], index: 0, kind: input, shape index: {}]   ;;  %s1104_s1 = inlined_call_operand.vmem [shape: s32[8,1], index: 1, kind: input, shape index: {}]   ;;  %s1105_s2 = inlined_call_operand.vmem [shape: f32[8,64], index: 2, kind: input, shape index: {}]   ;;  %s1106_s3 = inlined_call_operand.vmem [shape: f32[8,48], index: 3, kind: input, shape index: {}]   ;;  %s1107_s4 = inlined_call_operand.hbm [shape: f32[64,128], index: 4, kind: input, shape index: {}]   ;;  %s1108_s5 = inlined_call_operand.vmem [shape: f32[1,128], index: 5, kind: input, shape index: {}]   ;;  %s1109_s6 = inlined_call_operand.hbm [shape: f32[48,128], index: 6, kind: input, shape index: {}]   ;;  %s1110_s7 = inlined_call_operand.vmem [shape: f32[1,128], index: 7, kind: input, shape index: {}]   ;;  %s1111_s8 = inlined_call_operand.vmem [shape: f32[8,128], index: 8, kind: input, shape index: {}]   ;;  %s1112_s9 = inlined_call_operand.hbm [shape: f32[3], index: 9, kind: output, shape index: {}]  }
   0x1   :  { %15 = vsyncpa [#allocation3], 0 }
   0x2   :  { %16 = vsyncpa [#allocation8], 0 }
   0x3   :  { %17 = vsyncpa [#allocation5], 0  ;;  %s872_s11 = scalar_lea.hbm %s1103_s0, 16 }
   0x4   :  { %p873_p0 = scmp.ne.s32.totalorder %s1103_s0, %s872_s11  ;;  %p876_p1 = scmp.lt.u32.totalorder %s872_s11, %s1103_s0 }
   0x6   :  { %p878_p2 = pnand %p876_p1, %p873_p0 }
   0x8   :  { %881 = shalt.err (!%p878_p2)
}
   0x9   :  { %s944_s16 = smov [#allocation2]   ;;  %s945_s19 = smov [#allocation6]  }
   0xa   :  { %25 = dma.hbm_to_smem %s1103_s0, 16, %s944_s16, [#allocation4]  }
   0xb   :  { %s37_s20 = sshll.u32 %s945_s19, 4  ;;  %s882_s23 = scalar_lea.hbm %s1107_s4, 1024  ;;  %s38_s20 = int_to_ptr.vmem [resolvable:$true] %s37_s20 }
   0xc   :  { %p883_p3 = scmp.ne.s32.totalorder %s1107_s4, %s882_s23  ;;  %p886_p4 = scmp.lt.u32.totalorder %s882_s23, %s1107_s4 }
   0xe   :  { %p888_p5 = pnand %p886_p4, %p883_p3 }
  0x10   :  { %891 = shalt.err (!%p888_p5)
}
  0x11   :  { %s892_s28 = scalar_lea.vmem %s38_s20, 1024  ;;  %p897_p7 = scmp.lt.s32.totalorder %s38_s20, %s38_s20 }
  0x12   :  { %p893_p6 = scmp.ne.s32.totalorder %s38_s20, %s892_s28  ;;  %p898_p8 = scmp.lt.s32.totalorder %s892_s28, %s892_s28 }
  0x14   :  { %p899_p9 = por %p898_p8, %p897_p7 }
  0x16   :  { %p900_p10 = pnand %p899_p9, %p893_p6 }
  0x18   :  { %903 = shalt.err (!%p900_p10)
}
  0x19   :  { %s946_s0 = smov 128   ;;  %s947_s29 = smov 8  }
  0x1a   :  { %43 = dma.hbm_to_vmem [thread:$0]  %s1107_s4, 1024, %s38_s20, [#allocation3], %s946_s0, %s946_s0, %s947_s29  }
  0x1b   :  { %s948_s11 = smov [#allocation7]   ;;  %s904_s15 = scalar_lea.hbm %s1109_s6, 768 }
  0x1c   :  { %s51_s12 = sshll.u32 %s948_s11, 4  ;;  %p905_p11 = scmp.ne.s32.totalorder %s1109_s6, %s904_s15  ;;  %s52_s12 = int_to_ptr.vmem [resolvable:$true] %s51_s12 }
  0x1d   :  { %p908_p12 = scmp.lt.u32.totalorder %s904_s15, %s1109_s6 }
  0x1f   :  { %p910_p13 = pnand %p908_p12, %p905_p11 }
  0x21   :  { %913 = shalt.err (!%p910_p13)
}
  0x22   :  { %s914_s21 = scalar_lea.vmem %s52_s12, 768  ;;  %p919_p1 = scmp.lt.s32.totalorder %s52_s12, %s52_s12 }
  0x23   :  { %p915_p0 = scmp.ne.s32.totalorder %s52_s12, %s914_s21  ;;  %p920_p2 = scmp.lt.s32.totalorder %s914_s21, %s914_s21 }
  0x25   :  { %p921_p3 = por %p920_p2, %p919_p1 }
  0x27   :  { %p922_p4 = pnand %p921_p3, %p915_p0 }
  0x29   :  { %925 = shalt.err (!%p922_p4)
}
  0x2a   :  { %57 = dma.hbm_to_vmem [thread:$0]  %s1109_s6, 768, %s52_s12, [#allocation8], %s946_s0, %s946_s0, %s947_s29  }
  0x2b   :  { %936 = dma.done.wait [#allocation4], 16  }
  0x2c   :  { %937 = vsyncadd [#allocation4], 4294967280 }
  0x2d   :  { %938 = dma.done.wait [#allocation3], 1024  }
  0x2e   :  { %939 = vsyncadd [#allocation3], 4294966272 }
  0x2f   :  { %940 = dma.done.wait [#allocation8], 768  }
  0x30   :  { %941 = vsyncadd [#allocation8], 4294966528 }
  0x31   :  { %71 = sfence }
  0x32   :  { %v73_v0 = vld [vmem:[#allocation6] sm:$0xff]  ;;  %v74_v1 = vld [vmem:[#allocation6 + $0x8] sm:$0xff]  ;;  %v949_v3 = vmov 0.0|0.0   ;;  %v75_v6 = vld [vmem:[#allocation6 + $0x10] sm:$0xff]  ;;  %vm950_vm0 = vmmov 0   ;;  %v951_v11 = vmov 0.0   ;;  %v277_v28 = vlaneseq }
  0x33   :  { %v163_v2 = vld [vmem:[#allocation7] sm:$0xff]  ;;  %802 = vmatprep.subr.bf16.mxu0 %v949_v3  ;;  %814 = vmatprep.subr.bf16.mxu1 %v949_v3  ;;  %v803_v4 = vpack.c.bf16 %v74_v1, %v73_v0  ;;  %v164_v5 = vld [vmem:[#allocation7 + $0x8] sm:$0xff]  ;;  %v76_v7 = vld [vmem:[#allocation6 + $0x18] sm:$0xff]  ;;  %v952_v13 = vmov 0   ;;  %vm176_vm1 = vcmask 392192   ;;  %vm88_vm2 = vcmask 523264  }
  0x34   :  { %v815_v8 = vpack.c.bf16 %v164_v5, %v163_v2  ;;  %v165_v9 = vld [vmem:[#allocation7 + $0x10] sm:$0xff]  ;;  %v166_v10 = vld [vmem:[#allocation7 + $0x18] sm:$0xff]  ;;  %779 = vmatprep.mubr.msk.f32.mxu1 %vm950_vm0, %v951_v11  ;;  %764 = vmatprep.mubr.msk.f32.mxu0 %vm950_vm0, %v951_v11  ;;  %v806_v12 = vpack.c.bf16 %v76_v7, %v75_v6  ;;  %v77_v15 = vld [vmem:[#allocation6 + $0x20] sm:$0xff]  ;;  %v1064_v29 = vand.u32 127, %v277_v28  ;;  %vm286_vm3 = vcmask 64512   ;;  %s926_s21 = scalar_lea.hbm %s1112_s9, 16 }
  0x35   :  { %804 = vmatpush3.bf16.msra.mxu0 %v803_v4  ;;  %843 = vset.pattern.permute.xlu0 %v952_v13  ;;  %v818_v14 = vpack.c.bf16 %v166_v10, %v165_v9  ;;  %v78_v16 = vld [vmem:[#allocation6 + $0x28] sm:$0xff]  ;;  %v167_v17 = vld [vmem:[#allocation7 + $0x20] sm:$0xff]  ;;  %v79_v22 = vld [vmem:[#allocation6 + $0x30] sm:$0xff]  ;;  %vm625_vm12 = vcmask 7168   ;;  %p927_p5 = scmp.ne.s32.totalorder %s1112_s9, %s926_s21  ;;  %p930_p6 = scmp.lt.u32.totalorder %s926_s21, %s1112_s9 }
  0x36   :  { %816 = vmatpush3.bf16.msra.mxu1 %v815_v8  ;;  %805 = vmatprep.subr.bf16.mxu0 %v949_v3  ;;  %v168_v18 = vld [vmem:[#allocation7 + $0x28] sm:$0xff]  ;;  %v276_v19 = vld [vmem:[%s1104_s1] sm:$0xff]  ;;  %v809_v20 = vpack.c.bf16 %v78_v16, %v77_v15  ;;  %v80_v23 = vld [vmem:[#allocation6 + $0x38] sm:$0xff] }
  0x37   :  { %817 = vmatprep.subr.bf16.mxu1 %v949_v3  ;;  %280 = vperm.xlu0 %843, %v276_v19   ;;  %v821_v21 = vpack.c.bf16 %v168_v18, %v167_v17  ;;  %v812_v24 = vpack.c.bf16 %v80_v23, %v79_v22  ;;  %v162_v25 = vld [vmem:[%s1106_s3] sm:$0xff]  ;;  %p932_p7 = pnand %p930_p6, %p927_p5 }
  0x38   :  { %v285_v26 = vld [vmem:[%s1111_s8] sm:$0xff] }
  0x39   :  { %807 = vmatpush3.bf16.msra.mxu0 %v806_v12  ;;  %v72_v27 = vld [vmem:[%s1105_s2] sm:$0xff] }
  0x3a   :  { %819 = vmatpush3.bf16.msra.mxu1 %v818_v14  ;;  %808 = vmatprep.subr.bf16.mxu0 %v949_v3  ;;  %v718_v32 = vld [vmem:[%s1110_s7] ss:$0 sm:$0xff]  ;;  %s722_s7 = sld [smem:[#allocation2 + $0x1]] }
  0x3b   :  { %820 = vmatprep.subr.bf16.mxu1 %v949_v3  ;;  %v716_v35 = vld [vmem:[%s1108_s5] ss:$0 sm:$0xff]  ;;  %s374_s5 = sld [smem:[#allocation2]] }
  0x3d   :  { %810 = vmatpush3.bf16.msra.mxu0 %v809_v20 }
  0x3e   :  { %822 = vmatpush3.bf16.msra.mxu1 %v821_v21  ;;  %811 = vmatprep.subr.bf16.mxu0 %v949_v3 }
  0x3f   :  { %782 = vmatprep.subr.mxu1 %v951_v11 }
  0x40   :  { %v380_v4 = vstv %s722_s7 }
  0x41   :  { %780 = vmatmul.mubr.msk.f32.vlgmr.msra.gmra.mrb[0].mxu1 %vm176_vm1, %v162_v25  ;;  %813 = vmatpush3.bf16.msra.mxu0 %v812_v24  ;;  %v375_v1 = vstv %s374_s5  ;;  %v381_v5 = vmul.f32 1.442695, %v380_v4 }
  0x42   :  { %783 = vmatpush3.msra.mxu1 %v285_v26  ;;  %784 = vmatprep.mubr.msk.f32.mxu1 %vm950_vm0, %v951_v11  ;;  %v376_v2 = vmul.f32 1.442695, %v375_v1 }
  0x43   :  { %792 = vmatprep.subr.mxu1 %v951_v11  ;;  %787 = vmatprep.subr.mxu0 %v951_v11 }
  0x44   :  { %765 = vmatmul.mubr.msk.f32.vlgmr.msra.gmra.mrb[0].mxu0 %vm88_vm2, %v72_v27 }
  0x45   :  { %789 = vmatprep.mubr.msk.f32.mxu0 %vm950_vm0, %v951_v11 }
  0xb6   :  { %v281_v30 = vpop.permute.xlu0 %280 }
  0xb7   :  { %vm282_vm4 = vcmp.eq.s32.totalorder %v281_v30, %v1064_v29 }
  0xb8   :  { %v720_v31 = vsel %vm282_vm4, 1.0, %v951_v11 }
  0xb9   :  { %785 = vmatmul.mubr.msk.f32.vlgmr.msra.gmra.mrb[2].mxu1 %vm286_vm3, %v720_v31 }
  0xba   :  { %794 = vmatprep.mubr.msk.f32.mxu1 %vm950_vm0, %v951_v11 }
 0x114   :  { %v246_v33 = vpop.f32.mrb[0].mxu1 }
 0x115   :  { %v247_v34 = vadd.f32 %v718_v32, %v246_v33  ;;  %v781_v36 = vpop.f32.mrb[1].mxu1 }
 0x117   :  { %v158_v37 = vpop.f32.mrb[0].mxu0  ;;  %v263_v38 = vmul.f32 %v247_v34, %v247_v34 }
 0x118   :  { %v159_v39 = vadd.f32 %v716_v35, %v158_v37  ;;  %v766_v40 = vpop.f32.mrb[1].mxu0 }
 0x119   :  { %264 = vadd.xlane.f32.xlu1 %v263_v38 }
 0x11a   :  { %v250_v41 = vmul.f32 %v159_v39, %v159_v39 }
 0x11c   :  { %251 = vadd.xlane.f32.xlu0 %v250_v41 }
 0x18c   :  { %v356_v42 = vpop.f32.mrb[2].mxu1 }
 0x18d   :  { %v786_v43 = vpop.f32.mrb[3].mxu1 }
 0x1a6   :  { %v265_v44 = vpop.xlane.xlu1 %264 }
 0x1a7   :  { %844 = vrsqrt.f32 %v265_v44  ;;  %vm268_vm5 = vcmp.eq.f32.partialorder %v265_v44, inf  ;;  %v271_v47 = vand.u32 2147483648, %v265_v44  ;;  %vm270_vm6 = vcmp.eq.f32.partialorder %v265_v44, 0.0 }
 0x1a9   :  { %v252_v45 = vpop.xlane.xlu0 %251 }
 0x1aa   :  { %846 = vrsqrt.f32 %v252_v45  ;;  %vm255_vm7 = vcmp.eq.f32.partialorder %v252_v45, inf  ;;  %v258_v54 = vand.u32 2147483648, %v252_v45  ;;  %vm257_vm8 = vcmp.eq.f32.partialorder %v252_v45, 0.0 }
 0x1b1   :  { %v845_v46 = vpop.eup %844 }
 0x1b2   :  { %v267_v48 = vmul.f32 %v845_v46, %v265_v44 }
 0x1b4   :  { %v847_v49 = vpop.eup %846  ;;  %v269_v50 = vsel %vm268_vm5, %v265_v44, %v267_v48 }
 0x1b5   :  { %v272_v51 = vsel %vm270_vm6, %v271_v47, %v269_v50  ;;  %v254_v52 = vmul.f32 %v847_v49, %v252_v45 }
 0x1b6   :  { %v273_v53 = vmax.f32 %v272_v51, 1e-12 }
 0x1b7   :  { %v256_v55 = vsel %vm255_vm7, %v252_v45, %v254_v52 }
 0x1b8   :  { %848 = vrcp.f32 %v273_v53  ;;  %v259_v56 = vsel %vm257_vm8, %v258_v54, %v256_v55 }
 0x1b9   :  { %v260_v57 = vmax.f32 %v259_v56, 1e-12 }
 0x1bb   :  { %850 = vrcp.f32 %v260_v57 }
 0x1bc   :  { %852 = vpow2.f32 %v376_v2 }
 0x1bd   :  { %854 = vpow2.f32 %v381_v5 }
 0x1c2   :  { %v849_v58 = vpop.eup %848 }
 0x1c3   :  { %v275_v59 = vmul.f32 %v849_v58, %v247_v34  ;;  %v600_v34 = vshrl.u32 %v277_v28, 7 }
 0x1c5   :  { %v851_v60 = vpop.eup %850  ;;  %793 = vmatpush3.xpose.msra.mxu1 %v275_v59  ;;  %vm601_vm11 = vcmp.eq.s32.totalorder %v600_v34, %v1064_v29 }
 0x1c6   :  { %v262_v61 = vmul.f32 %v851_v60, %v159_v39  ;;  %v853_v3 = vpop.eup %852  ;;  %v723_v39 = vsel %vm601_vm11, 1.0, %v951_v11 }
 0x1c7   :  { %823 = vpush %v853_v3  ;;  %v855_v6 = vpop.eup %854 }
 0x1c8   :  { %v357_v62 = vadd.f32 %v356_v42, %v262_v61  ;;  %788 = vmatpush3.xpose.msra.mxu0 %v262_v61  ;;  %795 = vmatmul.mubr.f32.vlgmr.msra.gmra.mrb[4].mxu1 %v262_v61  ;;  %825 = vpush %v855_v6 }
 0x1c9   :  { %797 = vmatprep.subr.mxu0 %v951_v11 }
 0x1ca   :  { %v360_v63 = vmul.f32 0.5, %v357_v62 }
 0x1cb   :  { %790 = vmatmul.mubr.f32.vlgmr.msra.gmra.mrb[2].mxu0 %v275_v59 }
 0x1cc   :  { %798 = vmatpush3.xpose.msra.mxu0 %v262_v61  ;;  %v361_v0 = vmul.f32 %v360_v63, %v360_v63  ;;  %799 = vmatprep.mubr.msk.f32.mxu0 %vm950_vm0, %v951_v11 }
 0x1ce   :  { %362 = vadd.xlane.f32.xlu1 %v361_v0 }
 0x1f8   :  { %s824_s0 = spop %823 }
 0x1f9   :  { %v454_v17 = vstv %s824_s0  ;;  %s826_s29 = spop %825 }
 0x1fa   :  { %v597_v35 = vstv %s826_s29 }
 0x25b   :  { %v363_v7 = vpop.xlane.xlu1 %362 }
 0x25c   :  { %856 = vrsqrt.f32 %v363_v7  ;;  %vm366_vm9 = vcmp.eq.f32.partialorder %v363_v7, inf  ;;  %v369_v10 = vand.u32 2147483648, %v363_v7  ;;  %vm368_vm10 = vcmp.eq.f32.partialorder %v363_v7, 0.0 }
 0x266   :  { %v857_v8 = vpop.eup %856 }
 0x267   :  { %v365_v9 = vmul.f32 %v857_v8, %v363_v7 }
 0x269   :  { %v367_v12 = vsel %vm366_vm9, %v363_v7, %v365_v9 }
 0x26a   :  { %v370_v13 = vsel %vm368_vm10, %v369_v10, %v367_v12 }
 0x26b   :  { %v371_v14 = vmax.f32 %v370_v13, 1e-12 }
 0x26d   :  { %858 = vrcp.f32 %v371_v14 }
 0x277   :  { %v859_v15 = vpop.eup %858 }
 0x278   :  { %v373_v16 = vmul.f32 %v859_v15, %v360_v63 }
 0x27a   :  { %800 = vmatmul.mubr.f32.vlgmr.msra.gmra.mrb[4].mxu0 %v373_v16 }
 0x29b   :  { %v522_v18 = vpop.f32.mrb[4].mxu1 }
 0x29c   :  { %v526_v19 = vmul.f32 %v522_v18, %v454_v17  ;;  %v796_v20 = vpop.f32.mrb[5].mxu1 }
 0x29e   :  { %v450_v21 = vpop.f32.mrb[2].mxu0  ;;  %v639_v22 = vsel %vm286_vm3, %v526_v19, -inf }
 0x29f   :  { %v455_v23 = vmul.f32 %v454_v17, %v450_v21  ;;  %640 = vmax.xlane.f32.xlu1 %v639_v22  ;;  %v791_v24 = vpop.f32.mrb[3].mxu0 }
 0x2a1   :  { %v612_v25 = vsel %vm286_vm3, %v455_v23, -inf  ;;  %v604_v49 = vmul.f32 %v723_v39, %v455_v23 }
 0x2a3   :  { %613 = vmax.xlane.f32.xlu1 %v612_v25  ;;  %v605_v50 = vsel %vm286_vm3, %v604_v49, 0.0 }
 0x32c   :  { %v641_v26 = vpop.xlane.xlu1 %640 }
 0x32d   :  { %v642_v31 = vsub.f32 %v526_v19, %v641_v26 }
 0x32f   :  { %v643_v33 = vmul.f32 1.442695, %v642_v31 }
 0x330   :  { %v614_v27 = vpop.xlane.xlu1 %613 }
 0x331   :  { %v615_v30 = vsub.f32 %v455_v23, %v614_v27 }
 0x333   :  { %v616_v32 = vmul.f32 1.442695, %v615_v30 }
 0x335   :  { %860 = vpow2.f32 %v616_v32 }
 0x336   :  { %862 = vpow2.f32 %v643_v33 }
 0x33f   :  { %v861_v42 = vpop.eup %860 }
 0x340   :  { %v618_v44 = vsel %vm286_vm3, %v861_v42, 0.0  ;;  %v863_v28 = vpop.eup %862 }
 0x341   :  { %v645_v45 = vsel %vm286_vm3, %v863_v28, 0.0 }
 0x34d   :  { %v593_v36 = vpop.f32.mrb[4].mxu0 }
 0x34e   :  { %v598_v37 = vmul.f32 %v597_v35, %v593_v36  ;;  %v801_v38 = vpop.f32.mrb[5].mxu0 }
 0x350   :  { %v665_v40 = vsel %vm286_vm3, %v598_v37, -inf  ;;  %v608_v41 = vmul.f32 %v723_v39, %v598_v37 }
 0x351   :  { %666 = vmax.xlane.f32.xlu1 %v665_v40 }
 0x352   :  { %v609_v43 = vsel %vm286_vm3, %v608_v41, 0.0 }
 0x353   :  { %610 = vadd.xlane.f32.xlu0 %v609_v43 }
 0x355   :  { %619 = vadd.xlane.f32.xlu1 %v618_v44 }
 0x359   :  { %646 = vadd.xlane.f32.xlu1 %v645_v45 }
 0x3de   :  { %v667_v29 = vpop.xlane.xlu1 %666 }
 0x3df   :  { %v668_v46 = vsub.f32 %v598_v37, %v667_v29 }
 0x3e0   :  { %v611_v4 = vpop.xlane.xlu0 %610 }
 0x3e1   :  { %v669_v47 = vmul.f32 1.442695, %v668_v46 }
 0x3e2   :  { %v620_v51 = vpop.xlane.xlu1 %619 }
 0x3e3   :  { %864 = vpow2.f32 %v669_v47 }
 0x3e4   :  { %866 = vlog2.f32 %v620_v51 }
 0x3e6   :  { %v647_v52 = vpop.xlane.xlu1 %646 }
 0x3e7   :  { %868 = vlog2.f32 %v647_v52 }
 0x3ed   :  { %v865_v11 = vpop.eup %864 }
 0x3ee   :  { %v671_v48 = vsel %vm286_vm3, %v865_v11, 0.0  ;;  %v867_v53 = vpop.eup %866 }
 0x3ef   :  { %672 = vadd.xlane.f32.xlu1 %v671_v48  ;;  %v622_v55 = vmul.f32 0.6931472, %v867_v53 }
 0x3f1   :  { %v869_v54 = vpop.eup %868  ;;  %v623_v58 = vadd.f32 %v622_v55, %v614_v27 }
 0x3f2   :  { %v649_v56 = vmul.f32 0.6931472, %v869_v54 }
 0x3f3   :  { %606 = vadd.xlane.f32.xlu1 %v605_v50 }
 0x3f4   :  { %v650_v59 = vadd.f32 %v649_v56, %v641_v26 }
 0x47c   :  { %v673_v57 = vpop.xlane.xlu1 %672 }
 0x47d   :  { %870 = vlog2.f32 %v673_v57 }
 0x480   :  { %v607_v60 = vpop.xlane.xlu1 %606 }
 0x481   :  { %v624_v61 = vsub.f32 %v623_v58, %v607_v60  ;;  %v651_v62 = vsub.f32 %v650_v59, %v607_v60 }
 0x483   :  { %v626_v63 = vsel %vm625_vm12, %v624_v61, 0.0  ;;  %v652_v0 = vsel %vm625_vm12, %v651_v62, 0.0 }
 0x484   :  { %627 = vadd.xlane.f32.xlu1 %v626_v63  ;;  %653 = vadd.xlane.f32.xlu0 %v652_v0 }
 0x487   :  { %v871_v1 = vpop.eup %870 }
 0x488   :  { %v675_v2 = vmul.f32 0.6931472, %v871_v1 }
 0x48a   :  { %v676_v3 = vadd.f32 %v675_v2, %v667_v29 }
 0x48c   :  { %v677_v5 = vsub.f32 %v676_v3, %v611_v4 }
 0x48e   :  { %v678_v6 = vsel %vm625_vm12, %v677_v5, 0.0 }
 0x48f   :  { %679 = vadd.xlane.f32.xlu1 %v678_v6 }
 0x511   :  { %v628_v7 = vpop.xlane.xlu1 %627  ;;  %v654_v8 = vpop.xlane.xlu0 %653 }
 0x512   :  { %v629_v9 = vrot.slane %v628_v7, 4  ;;  %v655_v10 = vrot.slane %v654_v8, 4 }
 0x514   :  { %v630_v12 = vadd.f32 %v629_v9, %v628_v7  ;;  %v656_v13 = vadd.f32 %v655_v10, %v654_v8 }
 0x516   :  { %v631_v14 = vrot.slane %v630_v12, 2  ;;  %v657_v15 = vrot.slane %v656_v13, 2 }
 0x518   :  { %v658_v16 = vadd.f32 %v657_v15, %v656_v13  ;;  %v632_v17 = vadd.f32 %v631_v14, %v630_v12 }
 0x51a   :  { %v633_v18 = vrot.slane %v632_v17, 1  ;;  %v659_v19 = vrot.slane %v658_v16, 1 }
 0x51c   :  { %v680_v20 = vpop.xlane.xlu1 %679  ;;  %v634_v21 = vadd.f32 %v633_v18, %v632_v17  ;;  %v660_v22 = vadd.f32 %v659_v19, %v658_v16 }
 0x51d   :  { %v681_v23 = vrot.slane %v680_v20, 4 }
 0x51e   :  { %827 = vpush %v634_v21 }
 0x51f   :  { %v682_v24 = vadd.f32 %v681_v23, %v680_v20  ;;  %829 = vpush %v660_v22 }
 0x521   :  { %v683_v25 = vrot.slane %v682_v24, 2 }
 0x523   :  { %v684_v26 = vadd.f32 %v683_v25, %v682_v24 }
 0x525   :  { %v685_v27 = vrot.slane %v684_v26, 1 }
 0x527   :  { %v686_v30 = vadd.f32 %v685_v27, %v684_v26 }
 0x529   :  { %831 = vpush %v686_v30 }
 0x54f   :  { %s828_s30 = spop %827 }
 0x550   :  { %s638_s10 = smul.f32 0.125, %s828_s30  ;;  %s830_s11 = spop %829 }
 0x551   :  { %s664_s12 = smul.f32 0.125, %s830_s11 }
 0x553   :  { %s691_s13 = sadd.f32 %s664_s12, %s638_s10 }
 0x555   :  { %s692_s14 = smul.f32 0.5, %s691_s13 }
 0x557   :  { %695 = sst [smem:[#allocation9]] %s692_s14 }
 0x55a   :  { %s832_s15 = spop %831 }
 0x55b   :  { %s690_s16 = smul.f32 0.125, %s832_s15 }
 0x55d   :  { %s693_s17 = sadd.f32 %s692_s14, %s690_s16 }
 0x55e   :  { %697 = sst [smem:[#allocation9 + $0x1]] %s690_s16 }
 0x55f   :  { %699 = sst [smem:[#allocation9 + $0x2]] %s693_s17 }
 0x560   :  { %935 = shalt.err (!%p932_p7)
}
 0x561   :  { %s953_s23 = smov [#allocation9]  }
 0x562   :  { %707 = dma.smem_to_hbm %s953_s23, 16, %s1112_s9, [#allocation5]  }
 0x563   :  { %942 = dma.done.wait [#allocation5], 16  }
 0x564   :  { %943 = vsyncadd [#allocation5], 4294967280 }
 0x565   :  { %711 = sfence }
 0x566   :  { %712 = vsyncpa [#allocation3], 1 }
 0x567   :  { %713 = vsyncpa [#allocation8], 1 }
 0x568   :  { %714 = vsyncpa [#allocation4], 1 }
 0x569   :  { %715 = vsyncpa [#allocation5], 1 }

</bundles_post_ra>
